<compile_context>
chip_gen: v7x
topology: tpu7x:2x2x1
jax: 0.10.0
libtpu: 0.0.40
codegen_flags: <defaults>
</compile_context>

<pallas_src>
import functools

import jax
import jax.numpy as jnp
from jax import lax
from jax.experimental import pallas as pl
from jax.experimental.pallas import tpu as pltpu


def _mhsa_kernel(q_ref, kv_ref, w_ref, emb_ref, out_ref, *, heads, dim_head, scale):
    # q_ref   : (1, TX, C)        bf16  query tile (flattened spatial positions)
    # kv_ref  : (1, Y, C)         bf16  key/value positions for this batch
    # w_ref   : (C, heads*D)      bf16  packed 1x1-conv projection weight
    # emb_ref : (Y, heads*D)      f32   abs-pos embedding tiled across heads
    # out_ref : (1, TX, heads*D)  f32   lane-dense output
    qf = q_ref[0]                 # (TX, C) bf16
    kf = kv_ref[0]                # (Y, C)  bf16
    w = w_ref[...]                # (C, heads*D) bf16

    # 1x1-conv projection for all heads in a single lane-dense matmul.
    # The query scale is applied to the small (TX, C) operand (projection is
    # linear, so this matches PyTorch's `q *= scale` after the conv).
    q_all = jnp.dot(qf * scale, w, preferred_element_type=jnp.float32)   # (TX, H*D)
    k_all = jnp.dot(kf, w, preferred_element_type=jnp.float32)           # (Y,  H*D)

    # Fused content + absolute-position logits: q . (k + emb)^T.
    kpe_all = (k_all + emb_ref[...]).astype(jnp.bfloat16)                # (Y, H*D)
    v_all = k_all.astype(jnp.bfloat16)                                   # (Y, H*D)
    q_b = q_all.astype(jnp.bfloat16)                                     # (TX, H*D)

    # Contract on the D axis of both operands -> no materialized transpose.
    dn = (((1,), (1,)), ((), ()))

    outs = []
    for h in range(heads):                     # heads is small & static
        sl = slice(h * dim_head, (h + 1) * dim_head)
        qh = q_b[:, sl]                        # (TX, D)
        kh = kpe_all[:, sl]                    # (Y,  D)
        vh = v_all[:, sl]                      # (Y,  D)

        logits = lax.dot_general(qh, kh, dn,
                                 preferred_element_type=jnp.float32)    # (TX, Y)

        # softmax over keys, kept in f32
        m = jnp.max(logits, axis=-1, keepdims=True)
        e = jnp.exp(logits - m)
        denom = jnp.sum(e, axis=-1, keepdims=True)
        p = e * pl.reciprocal(denom, approx=True)

        outs.append(jnp.dot(p.astype(jnp.bfloat16), vh,
                            preferred_element_type=jnp.float32))         # (TX, D)

    # Single lane-dense store of the full (TX, heads*D) tile.
    out_ref[0] = jnp.concatenate(outs, axis=-1).astype(out_ref.dtype)


def _pick_tx(x):
    """Query-tile size: full X when small, else a multiple-of-8 divisor <= 512."""
    if x <= 512:
        return x
    for tx in range(512, 7, -8):
        if x % tx == 0:
            return tx
    return x


def mhsa_pallas(qmap, kvmap, weight, pos_height, pos_width, *, heads, dim_head):
    """qmap/kvmap in NCHW; weight is the (heads*dim_head, in_channels) 1x1-conv weight."""
    b, c, hq, wq = qmap.shape
    _, _, hk, wk = kvmap.shape
    x = hq * wq
    y = hk * wk
    d = dim_head
    hd = heads * d
    scale = float(dim_head) ** -0.5
    tx = _pick_tx(x)
    n_tx = x // tx

    # ---- glue: layout plumbing & parameter prep (no heavy compute) ----
    # channels-last, flattened spatial; bf16 halves HBM DMA bytes.
    qflat = jnp.transpose(qmap, (0, 2, 3, 1)).reshape(b, x, c).astype(jnp.bfloat16)
    kvflat = jnp.transpose(kvmap, (0, 2, 3, 1)).reshape(b, y, c).astype(jnp.bfloat16)
    # packed projection weight: (heads*d, c) -> (c, heads*d), columns in (n d) order
    w_all = weight.T.astype(jnp.bfloat16)                               # (C, H*D)
    # AbsPosEmb: emb[hk, wk, d] = height[hk, d] + width[wk, d]; tile across heads.
    emb = (pos_height[:, None, :] + pos_width[None, :, :]).reshape(y, d)
    emb_all = jnp.tile(emb, (1, heads)).astype(jnp.float32)             # (Y, H*D)

    kernel = functools.partial(_mhsa_kernel, heads=heads, dim_head=d, scale=scale)

    # Rough per-step VMEM estimate (double-buffered IO + intermediates); only
    # raise the scoped limit when the default 32 MiB would be too small.
    est = (2 * (tx * c * 2) + 2 * (y * c * 2) + (c * hd * 2) + (y * hd * 4)
           + 2 * (tx * hd * 4)                       # IO (bf16 in, f32 out)
           + tx * y * 4 + 4 * y * hd * 4 + 2 * tx * hd * 4)   # intermediates
    vmem_limit = None
    if est > (32 << 20):
        vmem_limit = min(int(est * 1.5), 96 << 20)   # keep headroom; cap below v6e physical

    attn = pl.pallas_call(
        kernel,
        out_shape=jax.ShapeDtypeStruct((b, x, hd), jnp.float32),
        grid_spec=pltpu.PrefetchScalarGridSpec(
            num_scalar_prefetch=0,
            grid=(b, n_tx),
            in_specs=[
                pl.BlockSpec((1, tx, c), lambda bi, xi: (bi, xi, 0)),
                pl.BlockSpec((1, y, c), lambda bi, xi: (bi, 0, 0)),
                pl.BlockSpec((c, hd), lambda bi, xi: (0, 0)),
                pl.BlockSpec((y, hd), lambda bi, xi: (0, 0)),
            ],
            out_specs=pl.BlockSpec((1, tx, hd), lambda bi, xi: (bi, xi, 0)),
        ),
        compiler_params=pltpu.CompilerParams(
            dimension_semantics=("parallel", "parallel"),
            vmem_limit_bytes=vmem_limit),
    )(qflat, kvflat, w_all, emb_all)                                    # (B, X, H*D)

    # 'b (hq wq) (n d) -> b (n d) hq wq'
    return attn.reshape(b, hq, wq, hd).transpose(0, 3, 1, 2)


def mhsa_reference(qmap, kvmap, weight, pos_height, pos_width, *, heads, dim_head):
    """Pure-JAX f32 reference mirroring the PyTorch forward."""
    b, c, hq, wq = qmap.shape
    _, _, hk, wk = kvmap.shape
    scale = float(dim_head) ** -0.5
    proj = lambda z: jnp.einsum('oc,bchw->bohw', weight, z)
    q = proj(qmap)
    k = proj(kvmap)
    v = proj(kvmap)
    reshp = lambda z, h, w: z.reshape(b, heads, dim_head, h * w).transpose(0, 1, 3, 2)
    q = reshp(q, hq, wq) * scale
    k = reshp(k, hk, wk)
    v = reshp(v, hk, wk)
    emb = (pos_height[:, None, :] + pos_width[None, :, :]).reshape(hk * wk, dim_head)
    logits = jnp.einsum('bnxd,bnyd->bnxy', q, k) + jnp.einsum('bnxd,yd->bnxy', q, emb)
    weights = jax.nn.softmax(logits, axis=-1)
    attn = jnp.einsum('bnxy,bnyd->bnxd', weights, v)
    attn = attn.reshape(b, heads, hq, wq, dim_head).transpose(0, 1, 4, 2, 3)
    return attn.reshape(b, heads * dim_head, hq, wq)


if __name__ == "__main__":
    # small shapes consistent with the module
    B, C = 2, 4
    HQ, WQ = 4, 4
    HK, WK = 4, 4
    HEADS, DIM_HEAD = 2, 32
    OUT_CH = HEADS * DIM_HEAD

    key = jax.random.PRNGKey(0)
    k1, k2, k3, k4, k5 = jax.random.split(key, 5)

    qmap = jax.random.normal(k1, (B, C, HQ, WQ), dtype=jnp.float32)
    kvmap = jax.random.normal(k2, (B, C, HK, WK), dtype=jnp.float32)
    # nn.Conv2d(in, out, 1, bias=False) weight: (out, in, 1, 1) -> (out, in)
    conv_w = jax.random.normal(k3, (OUT_CH, C), dtype=jnp.float32) * (1.0 / C ** 0.5)
    # AbsPosEmb params: randn(hk, d) * d**-0.5, randn(wk, d) * d**-0.5
    pos_h = jax.random.normal(k4, (HK, DIM_HEAD), dtype=jnp.float32) * (DIM_HEAD ** -0.5)
    pos_w = jax.random.normal(k5, (WK, DIM_HEAD), dtype=jnp.float32) * (DIM_HEAD ** -0.5)

    out = mhsa_pallas(qmap, kvmap, conv_w, pos_h, pos_w,
                      heads=HEADS, dim_head=DIM_HEAD)
    out = jax.block_until_ready(out)

    ref = mhsa_reference(qmap, kvmap, conv_w, pos_h, pos_w,
                         heads=HEADS, dim_head=DIM_HEAD)
    assert out.shape == (B, OUT_CH, HQ, WQ)
    # bf16 matmuls + approx reciprocal => looser tolerance vs the f32 reference.
    assert jnp.allclose(out, ref, atol=5e-2, rtol=5e-2), "mismatch vs reference"

    print("KERNEL_OK")
</pallas_src>

<mosaic_0001>
module attributes {stable_mosaic.version = 11 : i64} {
  func.func @_mhsa_kernel(%arg0: i32, %arg1: i32, %arg2: memref<1x16x4xbf16, #tpu.memory_space<vmem>>, %arg3: memref<1x16x4xbf16, #tpu.memory_space<vmem>>, %arg4: memref<4x64xbf16, #tpu.memory_space<vmem>>, %arg5: memref<16x64xf32, #tpu.memory_space<vmem>>, %arg6: memref<1x16x64xf32, #tpu.memory_space<vmem>>) attributes {dimension_semantics = [#tpu.dimension_semantics<parallel>, #tpu.dimension_semantics<parallel>], iteration_bounds = array<i64: 2, 1>, scalar_prefetch = 0 : i64, scratch_operands = 0 : i64, tpu.core_type = #tpu.core_type<tc>, window_params = [{transform_indices = @transform_0, window_bounds = array<i64: 1, 16, 4>}, {transform_indices = @transform_1, window_bounds = array<i64: 1, 16, 4>}, {pipeline_mode = #tpu.pipeline_mode<synchronous>, transform_indices = @transform_2, window_bounds = array<i64: 4, 64>}, {pipeline_mode = #tpu.pipeline_mode<synchronous>, transform_indices = @transform_3, window_bounds = array<i64: 16, 64>}, {transform_indices = @transform_4, window_bounds = array<i64: 1, 16, 64>}]} {
    %c0 = arith.constant 0 : index
    %c0_0 = arith.constant 0 : index
    %c0_1 = arith.constant 0 : index
    %0 = vector.load %arg2[%c0, %c0_0, %c0_1] : memref<1x16x4xbf16, #tpu.memory_space<vmem>>, vector<1x16x4xbf16>
    %1 = vector.shape_cast %0 : vector<1x16x4xbf16> to vector<16x4xbf16>
    %c0_2 = arith.constant 0 : index
    %c0_3 = arith.constant 0 : index
    %c0_4 = arith.constant 0 : index
    %2 = vector.load %arg3[%c0_2, %c0_3, %c0_4] : memref<1x16x4xbf16, #tpu.memory_space<vmem>>, vector<1x16x4xbf16>
    %3 = vector.shape_cast %2 : vector<1x16x4xbf16> to vector<16x4xbf16>
    %c0_5 = arith.constant 0 : index
    %c0_6 = arith.constant 0 : index
    %4 = vector.load %arg4[%c0_5, %c0_6] : memref<4x64xbf16, #tpu.memory_space<vmem>>, vector<4x64xbf16>
    %cst = arith.constant 1.767580e-01 : bf16
    %5 = vector.broadcast %cst : bf16 to vector<16x4xbf16>
    %6 = arith.mulf %1, %5 : vector<16x4xbf16>
    %cst_7 = arith.constant dense<0.000000e+00> : vector<16x64xf32>
    %7 = tpu.matmul %6, %4, %cst_7 {dimension_numbers = #tpu.dot_dimension_numbers<[1], [0], [0], [1], [0, 0, 1, 1], [], []>} : vector<16x4xbf16>, vector<4x64xbf16>, vector<16x64xf32> -> vector<16x64xf32>
    %cst_8 = arith.constant dense<0.000000e+00> : vector<16x64xf32>
    %8 = tpu.matmul %3, %4, %cst_8 {dimension_numbers = #tpu.dot_dimension_numbers<[1], [0], [0], [1], [0, 0, 1, 1], [], []>} : vector<16x4xbf16>, vector<4x64xbf16>, vector<16x64xf32> -> vector<16x64xf32>
    %c0_9 = arith.constant 0 : index
    %c0_10 = arith.constant 0 : index
    %9 = vector.load %arg5[%c0_9, %c0_10] : memref<16x64xf32, #tpu.memory_space<vmem>>, vector<16x64xf32>
    %10 = arith.addf %8, %9 : vector<16x64xf32>
    %11 = arith.truncf %10 : vector<16x64xf32> to vector<16x64xbf16>
    %12 = arith.truncf %8 : vector<16x64xf32> to vector<16x64xbf16>
    %13 = arith.truncf %7 : vector<16x64xf32> to vector<16x64xbf16>
    %14 = vector.extract_strided_slice %13 {offsets = [0, 0], sizes = [16, 32], strides = [1, 1]} : vector<16x64xbf16> to vector<16x32xbf16>
    %15 = vector.extract_strided_slice %11 {offsets = [0, 0], sizes = [16, 32], strides = [1, 1]} : vector<16x64xbf16> to vector<16x32xbf16>
    %16 = vector.extract_strided_slice %12 {offsets = [0, 0], sizes = [16, 32], strides = [1, 1]} : vector<16x64xbf16> to vector<16x32xbf16>
    %cst_11 = arith.constant dense<0.000000e+00> : vector<16x16xf32>
    %17 = tpu.matmul %14, %15, %cst_11 {dimension_numbers = #tpu.dot_dimension_numbers<[1], [1], [0], [0], [0, 0, 1, 0], [], []>} : vector<16x32xbf16>, vector<16x32xbf16>, vector<16x16xf32> -> vector<16x16xf32>
    %cst_12 = arith.constant dense<0xFF800000> : vector<16xf32>
    %18 = vector.multi_reduction <maximumf>, %17, %cst_12 [1] : vector<16x16xf32> to vector<16xf32>
    %19 = vector.shape_cast %18 : vector<16xf32> to vector<16x1xf32>
    %20 = vector.broadcast %19 : vector<16x1xf32> to vector<16x16xf32>
    %21 = arith.subf %17, %20 : vector<16x16xf32>
    %22 = math.exp %21 : vector<16x16xf32>
    %cst_13 = arith.constant dense<0.000000e+00> : vector<16xf32>
    %23 = vector.multi_reduction <add>, %22, %cst_13 [1] : vector<16x16xf32> to vector<16xf32>
    %24 = vector.shape_cast %23 : vector<16xf32> to vector<16x1xf32>
    %25 = tpu.reciprocal %24 {approx = true} : vector<16x1xf32> -> vector<16x1xf32>
    %26 = vector.broadcast %25 : vector<16x1xf32> to vector<16x16xf32>
    %27 = arith.mulf %22, %26 : vector<16x16xf32>
    %28 = arith.truncf %27 : vector<16x16xf32> to vector<16x16xbf16>
    %cst_14 = arith.constant dense<0.000000e+00> : vector<16x32xf32>
    %29 = tpu.matmul %28, %16, %cst_14 {dimension_numbers = #tpu.dot_dimension_numbers<[1], [0], [0], [1], [0, 0, 1, 1], [], []>} : vector<16x16xbf16>, vector<16x32xbf16>, vector<16x32xf32> -> vector<16x32xf32>
    %30 = vector.extract_strided_slice %13 {offsets = [0, 32], sizes = [16, 32], strides = [1, 1]} : vector<16x64xbf16> to vector<16x32xbf16>
    %31 = vector.extract_strided_slice %11 {offsets = [0, 32], sizes = [16, 32], strides = [1, 1]} : vector<16x64xbf16> to vector<16x32xbf16>
    %32 = vector.extract_strided_slice %12 {offsets = [0, 32], sizes = [16, 32], strides = [1, 1]} : vector<16x64xbf16> to vector<16x32xbf16>
    %cst_15 = arith.constant dense<0.000000e+00> : vector<16x16xf32>
    %33 = tpu.matmul %30, %31, %cst_15 {dimension_numbers = #tpu.dot_dimension_numbers<[1], [1], [0], [0], [0, 0, 1, 0], [], []>} : vector<16x32xbf16>, vector<16x32xbf16>, vector<16x16xf32> -> vector<16x16xf32>
    %cst_16 = arith.constant dense<0xFF800000> : vector<16xf32>
    %34 = vector.multi_reduction <maximumf>, %33, %cst_16 [1] : vector<16x16xf32> to vector<16xf32>
    %35 = vector.shape_cast %34 : vector<16xf32> to vector<16x1xf32>
    %36 = vector.broadcast %35 : vector<16x1xf32> to vector<16x16xf32>
    %37 = arith.subf %33, %36 : vector<16x16xf32>
    %38 = math.exp %37 : vector<16x16xf32>
    %cst_17 = arith.constant dense<0.000000e+00> : vector<16xf32>
    %39 = vector.multi_reduction <add>, %38, %cst_17 [1] : vector<16x16xf32> to vector<16xf32>
    %40 = vector.shape_cast %39 : vector<16xf32> to vector<16x1xf32>
    %41 = tpu.reciprocal %40 {approx = true} : vector<16x1xf32> -> vector<16x1xf32>
    %42 = vector.broadcast %41 : vector<16x1xf32> to vector<16x16xf32>
    %43 = arith.mulf %38, %42 : vector<16x16xf32>
    %44 = arith.truncf %43 : vector<16x16xf32> to vector<16x16xbf16>
    %cst_18 = arith.constant dense<0.000000e+00> : vector<16x32xf32>
    %45 = tpu.matmul %44, %32, %cst_18 {dimension_numbers = #tpu.dot_dimension_numbers<[1], [0], [0], [1], [0, 0, 1, 1], [], []>} : vector<16x16xbf16>, vector<16x32xbf16>, vector<16x32xf32> -> vector<16x32xf32>
    %46 = tpu.concatenate %29, %45 in 1 : vector<16x32xf32>, vector<16x32xf32> -> vector<16x64xf32>
    %c0_19 = arith.constant 0 : index
    %c0_20 = arith.constant 0 : index
    %c0_21 = arith.constant 0 : index
    %47 = vector.load %arg6[%c0_19, %c0_20, %c0_21] : memref<1x16x64xf32, #tpu.memory_space<vmem>>, vector<1x16x64xf32>
    %48 = vector.shape_cast %47 : vector<1x16x64xf32> to vector<16x64xf32>
    %49 = vector.shape_cast %46 : vector<16x64xf32> to vector<1x16x64xf32>
    tpu.vector_store %arg6[%c0_19, %c0_20, %c0_21], %49 {strides = array<i32>} : memref<1x16x64xf32, #tpu.memory_space<vmem>>, vector<1x16x64xf32>,
    return
  }
  func.func @transform_0(%arg0: i32, %arg1: i32) -> (i32, i32, i32) {
    %c0_i32 = arith.constant 0 : i32
    %c0_i32_0 = arith.constant 0 : i32
    return %arg0, %arg1, %c0_i32 : i32, i32, i32
  }
  func.func @transform_1(%arg0: i32, %arg1: i32) -> (i32, i32, i32) {
    %c0_i32 = arith.constant 0 : i32
    %c0_i32_0 = arith.constant 0 : i32
    %c0_i32_1 = arith.constant 0 : i32
    return %arg0, %c0_i32, %c0_i32_0 : i32, i32, i32
  }
  func.func @transform_2(%arg0: i32, %arg1: i32) -> (i32, i32) {
    %c0_i32 = arith.constant 0 : i32
    %c0_i32_0 = arith.constant 0 : i32
    %c0_i32_1 = arith.constant 0 : i32
    return %c0_i32, %c0_i32_0 : i32, i32
  }
  func.func @transform_3(%arg0: i32, %arg1: i32) -> (i32, i32) {
    %c0_i32 = arith.constant 0 : i32
    %c0_i32_0 = arith.constant 0 : i32
    %c0_i32_1 = arith.constant 0 : i32
    return %c0_i32, %c0_i32_0 : i32, i32
  }
  func.func @transform_4(%arg0: i32, %arg1: i32) -> (i32, i32, i32) {
    %c0_i32 = arith.constant 0 : i32
    %c0_i32_0 = arith.constant 0 : i32
    return %arg0, %arg1, %c0_i32 : i32, i32, i32
  }
}

</mosaic_0001>

<bundles_post_ra>
// kernel: tpu_custom_call.1
= control target key start
LH: loop header
LB: loop body
LE: loop exit
PB: predicated region body
PF: predicated region fallthrough
CT: control target
= control target key end

     0   :  { %9 = vsyncpa [#allocation3], 0  ;;  %s1158_s0 = inlined_call_operand.vmem [shape: bf16[2,16,4], index: 0, kind: input, shape index: {}]   ;;  %s1159_s1 = inlined_call_operand.vmem [shape: bf16[2,16,4], index: 1, kind: input, shape index: {}]   ;;  %s1160_s2 = inlined_call_operand.vmem [shape: bf16[4,64], index: 2, kind: input, shape index: {}]   ;;  %s1161_s3 = inlined_call_operand.vmem [shape: f32[16,64], index: 3, kind: input, shape index: {}]   ;;  %s1162_s4 = inlined_call_operand.hbm [shape: f32[2,16,64], index: 4, kind: output, shape index: {}]  }
   0x1   :  { %11 = vsyncpa [#allocation3 + $0x1], 0  ;;  %s990_s15 = smov 0   ;;  %s992_s16 = smov 0  }
   0x2   :  { %s994_s17 = smov 0   ;;  %s996_s18 = smov 0  }
   0x3   :  { %s998_s19 = smov 0   ;;  %s1000_s20 = smov 0  }
   0x4 LB: > { %s726_s21 = sadd.s32 4294967295, %s956_s20   ;;  %s727_s22 = sadd.s32 4294967294, %s956_s20   ;;  %s956_s20 = sphi %s1000_s20, %s17_s20   ;;  %s952_s19 = sphi %s998_s19, %s1169_s19   ;;  %s948_s18 = sphi %s996_s18, %s1168_s18   ;;  %s944_s17 = sphi %s994_s17, %s1167_s17   ;;  %s940_s16 = sphi %s992_s16, %s1166_s16   ;;  %s936_s15 = sphi %s990_s15, %s1165_s15  }
   0x5   : > { %s29_s23 = sadd.s32 1, %s952_s19  ;;  %s134_s24 = sadd.s32 1, %s944_s17 }
   0x6   : > { %p31_p0 = scmp.ge.s32.totalorder %s29_s23, 2  ;;  %p144_p1 = scmp.ne.s32.totalorder %s944_s17, %s940_s16 }
   0x7   : > { %p145_p2 = scmp.eq.s32.totalorder %s726_s21, 1  ;;  %p150_p3 = scmp.ne.s32.totalorder %s940_s16, %s936_s15 }
   0x8   : > { %s1171_s23 = smov (%p31_p0, %s29_s23), 0  ;;  %p151_p5 = scmp.eq.s32.totalorder %s727_s22, 1 }
   0x9   : > { %p1030_p4 = por %p145_p2, %p144_p1  ;;  %s129_s26 = ssub.s32 %s952_s19, %s1171_s23 }
   0xa   : > { %p730_p6 = scmp.ge.s32.totalorder %s956_s20, 1  ;;  %p132_p7 = scmp.eq.s32.totalorder %s129_s26, 0 }
   0xb   : > { %p1037_p8 = por %p151_p5, %p150_p3  ;;  %p196_p9 = scmp.lt.s32.totalorder %s956_s20, 3 }
   0xc   : > { %s1043_s28 = scalar_select %p132_p7, %s944_s17, %s134_s24  }
   0xd   : > { %p197_p10 = pnand %p730_p6, %p196_p9 }
   0xe   : > { %v253_v0 = vld [vmem:[%s1160_s2] sm:$0x3] (!%p197_p10)  ;;  %vm265_vm0 = vcmask (!%p197_p10), 1041408   ;;  %p232_p11 = scmp.lt.s32.totalorder (!%p197_p10), %s948_s18, 1  ;;  %v958_v1 = vmov (!%p197_p10), 0.0   ;;  %vm959_vm1 = vmmov (!%p197_p10), 0  }
   0xf   : > { %200 = sbr.rel (%p197_p10) target bundleno = 1245 (0x4dd), region = 36  ;;  %770 = vmatprep.subr.bf16.mxu1 (!%p197_p10), %v958_v1  ;;  %v267_v2 = vsel (!%p197_p10), %vm265_vm0, %v253_v0, 0  ;;  %772 = vmatprep.mubr.msk.bf16.mxu1 (!%p197_p10), %vm959_vm1, %v958_v1  ;;  %vm261_vm2 = vcmask (!%p197_p10), 31744   ;;  %v359_v10 = vld [vmem:[%s1161_s3] sm:$0xff] (!%p197_p10)  ;;  %v360_v11 = vld [vmem:[%s1161_s3 + $0x8] sm:$0xff] (!%p197_p10)  ;;  %vm366_vm3 = vcmask (!%p197_p10), 261120  }
  0x10   : > { %771 = vmatpush3.bf16.msra.mxu1 (!%p197_p10), %v267_v2  ;;  %764 = vmatprep.subr.bf16.mxu0 (!%p197_p10), %v958_v1  ;;  %s960_s24 = smov (!%p197_p10), 96   ;;  %vm414_vm4 = vcmask (!%p197_p10), 130048   ;;  %s961_s26 = smov (!%p197_p10), 32   ;;  %vm616_vm5 = vcmask (!%p197_p10), 523264  }
  0x11   : > { %765 = vmatpush3.bf16.msra.mxu0 (!%p197_p10), %v267_v2  ;;  %766 = vmatprep.mubr.msk.bf16.mxu0 (!%p197_p10), %vm959_vm1, %v958_v1  ;;  %s228_s29 = sand.u32 (!%p197_p10), 1, %s940_s16   ;;  %s751_s7 = sshll.u32 (!%p197_p10), %s948_s18, 8 }
  0x12   : > { %782 = vmatprep.subr.bf16.mxu1 (!%p197_p10), %v958_v1  ;;  %776 = vmatprep.subr.bf16.mxu0 (!%p197_p10), %v958_v1  ;;  %s731_s30 = sshll.u32 (!%p197_p10), %s228_s29, 4  ;;  %s1109_s10 = scalar_lea.hbm (!%p197_p10), %s1162_s4, %s751_s7 }
  0x16   : > { %s233_s5 = scalar_select %p232_p11, %s948_s18, 1 }
  0x17   : > { %s1112_s18 = scalar_lea.sflag [#allocation3], %s228_s29 }
  0x18   : > { %s749_s6 = sshll.u32 %s233_s5, 3  ;;  %s230_s5 = scalar_lea.vmem [#allocation2], %s731_s30 }
  0x19   : > { %s245_s9 = scalar_lea.vmem %s1159_s1, %s749_s6  ;;  %s239_s12 = scalar_lea.vmem %s1158_s0, %s749_s6 }
  0x1a   : > { %v861_v3 = vld [vmem:[%s245_s9] sm:$0xff]   ;;  %s635_s6 = sshll.u32 %s230_s5, 4  ;;  %s1104_s6 = int_to_ptr.vmem [resolvable:$true] %s635_s6 }
  0x1b   : > { %v249_v4 = vld [vmem:[%s239_s12] sm:$0xf]  ;;  %v250_v5 = vld [vmem:[%s239_s12 + $0x4] sm:$0xf]  ;;  %773 = vmatmul.mubr.msk.bf16.vlgmr.msra.gmra.mrb[0].mxu1 %vm261_vm2, %v861_v3  ;;  %s878_s11 = scalar_lea.vmem %s1104_s6, 256  ;;  %s962_s12 = smov [#allocation2]  }
  0x1c   : > { %v254_v6 = vmul.bf16 1043676725, %v249_v4  ;;  %v255_v7 = vmul.bf16 1043676725, %v250_v5  ;;  %784 = vmatprep.mubr.msk.bf16.mxu1 %vm959_vm1, %v958_v1  ;;  %p879_p12 = scmp.ne.s32.totalorder %s1104_s6, %s878_s11  ;;  %s882_s13 = sshll.u32 %s962_s12, 4  ;;  %s883_s13 = int_to_ptr.vmem [resolvable:$false] %s882_s13 }
  0x1d   : > { %s884_s14 = scalar_lea.vmem %s883_s13, 512  ;;  %p885_p1 = scmp.lt.s32.totalorder %s1104_s6, %s883_s13 }
  0x1e   : > { %v736_v8 = vcombine.low %v254_v6, %v255_v7  ;;  %p880_p13 = pnand %p879_p12, %p1030_p4  ;;  %p886_p2 = scmp.lt.s32.totalorder %s884_s14, %s878_s11 }
  0x20   : > { %767 = vmatmul.mubr.msk.bf16.vlgmr.msra.gmra.mrb[0].mxu0 %vm261_vm2, %v736_v8  ;;  %p881_p0 = pneg %p880_p13  ;;  %p887_p3 = por %p886_p2, %p885_p1 }
  0x21   : > { %778 = vmatprep.mubr.msk.bf16.mxu0 %vm959_vm1, %v958_v1 }
  0x22   : > { %p888_p5 = pnand %p887_p3, %p881_p0 }
  0xee   : > { %v352_v9 = vpop.f32.mrb[0].mxu1 }
  0xef   : > { %v774_v12 = vpop.f32.mrb[1].mxu1  ;;  %v361_v14 = vadd.f32 %v359_v10, %v352_v9 }
  0xf0   : > { %v355_v13 = vpop.f32.mrb[2].mxu1 }
  0xf1   : > { %v362_v15 = vadd.f32 %v360_v11, %v355_v13  ;;  %v1074_v16 = vpack.c.bf16 %v355_v13, %v352_v9  ;;  %v775_v17 = vpop.f32.mrb[3].mxu1 }
  0xf3   : > { %v303_v18 = vpop.f32.mrb[0].mxu0  ;;  %783 = vmatpush3.bf16.msra.mxu1 %v1074_v16  ;;  %v363_v19 = vpack.c.bf16 %v362_v15, %v361_v14 }
  0xf4   : > { %v768_v20 = vpop.f32.mrb[1].mxu0  ;;  %794 = vmatprep.subr.bf16.mxu1 %v958_v1 }
  0xf5   : > { %v306_v21 = vpop.f32.mrb[2].mxu0  ;;  %486 = vrot.lane.b32.xlu0 %v363_v19, %s960_s24  ;;  %v371_v22 = vsel %vm366_vm3, %v363_v19, 0 }
  0xf6   : > { %v365_v23 = vpack.c.bf16 %v306_v21, %v303_v18  ;;  %v769_v24 = vpop.f32.mrb[3].mxu0  ;;  %777 = vmatpush3.bf16.xpose.msra.mxu0 %v371_v22 }
  0xf7   : > { %788 = vmatprep.subr.bf16.mxu0 %v958_v1 }
  0xf9   : > { %483 = vrot.lane.b32.xlu0 %v365_v23, %s960_s24 }
  0xfd   : > { %779 = vmatmul.mubr.msk.bf16.vlgmr.msra.gmra.mrb[4].mxu0 %vm366_vm3, %v365_v23 }
  0xfe   : > { %790 = vmatprep.mubr.msk.bf16.mxu0 %vm959_vm1, %v958_v1 }
 0x167   : > { %v487_v25 = vpop.permute.xlu0 %486 }
 0x168   : > { %v492_v26 = vsel %vm366_vm3, %v487_v25, 0 }
 0x169   : > { %789 = vmatpush3.bf16.xpose.msra.mxu0 %v492_v26 }
 0x16b   : > { %v484_v27 = vpop.permute.xlu0 %483 }
 0x170   : > { %791 = vmatmul.mubr.msk.bf16.vlgmr.msra.gmra.mrb[8].mxu0 %vm366_vm3, %v484_v27 }
 0x1d0   : > { %v407_v28 = vpop.f32.mrb[4].mxu0 }
 0x1d1   : > { %v780_v29 = vpop.f32.mrb[5].mxu0  ;;  %v415_v30 = vsel %vm414_vm4, %v407_v28, -inf }
 0x1d2   : > { %416 = vmax.xlane.f32.xlu1 %v415_v30  ;;  %v410_v31 = vpop.f32.mrb[6].mxu0 }
 0x1d3   : > { %v781_v32 = vpop.f32.mrb[7].mxu0  ;;  %v418_v33 = vsel %vm414_vm4, %v410_v31, -inf }
 0x1d6   : > { %419 = vmax.xlane.f32.xlu1 %v418_v33 }
 0x243   : > { %v528_v34 = vpop.f32.mrb[8].mxu0 }
 0x244   : > { %v792_v35 = vpop.f32.mrb[9].mxu0  ;;  %v535_v36 = vsel %vm414_vm4, %v528_v34, -inf }
 0x245   : > { %536 = vmax.xlane.f32.xlu0 %v535_v36  ;;  %v531_v37 = vpop.f32.mrb[10].mxu0 }
 0x246   : > { %v793_v38 = vpop.f32.mrb[11].mxu0  ;;  %v538_v39 = vsel %vm414_vm4, %v531_v37, -inf }
 0x247   : > { %539 = vmax.xlane.f32.xlu1 %v538_v39 }
 0x25f   : > { %v417_v40 = vpop.xlane.xlu1 %416 }
 0x260   : > { %v421_v41 = vsub.f32 %v407_v28, %v417_v40 }
 0x262   : > { %v423_v42 = vmul.f32 1.442695, %v421_v41 }
 0x263   : > { %v420_v43 = vpop.xlane.xlu1 %419 }
 0x264   : > { %862 = vpow2.f32 %v423_v42  ;;  %v422_v44 = vsub.f32 %v410_v31, %v420_v43 }
 0x266   : > { %v425_v45 = vmul.f32 1.442695, %v422_v44 }
 0x268   : > { %864 = vpow2.f32 %v425_v45 }
 0x26e   : > { %v863_v46 = vpop.eup %862 }
 0x26f   : > { %v427_v47 = vsel %vm414_vm4, %v863_v46, 0.0 }
 0x270   : > { %428 = vadd.xlane.f32.xlu1 %v427_v47 }
 0x272   : > { %v865_v48 = vpop.eup %864 }
 0x273   : > { %v430_v49 = vsel %vm414_vm4, %v865_v48, 0.0 }
 0x274   : > { %431 = vadd.xlane.f32.xlu1 %v430_v49 }
 0x2d2   : > { %v537_v50 = vpop.xlane.xlu0 %536 }
 0x2d3   : > { %v541_v51 = vsub.f32 %v528_v34, %v537_v50 }
 0x2d4   : > { %v540_v52 = vpop.xlane.xlu1 %539 }
 0x2d5   : > { %v543_v53 = vmul.f32 1.442695, %v541_v51  ;;  %v542_v54 = vsub.f32 %v531_v37, %v540_v52 }
 0x2d7   : > { %866 = vpow2.f32 %v543_v53  ;;  %v545_v55 = vmul.f32 1.442695, %v542_v54 }
 0x2d9   : > { %868 = vpow2.f32 %v545_v55 }
 0x2e1   : > { %v867_v56 = vpop.eup %866 }
 0x2e2   : > { %v547_v57 = vsel %vm414_vm4, %v867_v56, 0.0 }
 0x2e3   : > { %v869_v58 = vpop.eup %868  ;;  %548 = vadd.xlane.f32.xlu1 %v547_v57 }
 0x2e4   : > { %v550_v59 = vsel %vm414_vm4, %v869_v58, 0.0 }
 0x2e7   : > { %551 = vadd.xlane.f32.xlu1 %v550_v59 }
 0x2f8   : > { %559 = vrot.lane.b32.xlu1 %v1074_v16, %s960_s24 }
 0x2fd   : > { %v429_v60 = vpop.xlane.xlu1 %428 }
 0x2fe   : > { %870 = vrcp.f32 %v429_v60 }
 0x301   : > { %v432_v61 = vpop.xlane.xlu1 %431 }
 0x302   : > { %872 = vrcp.f32 %v432_v61 }
 0x308   : > { %v871_v62 = vpop.eup %870 }
 0x309   : > { %v435_v0 = vmul.f32 %v871_v62, %v863_v46 }
 0x30c   : > { %v873_v63 = vpop.eup %872 }
 0x30d   : > { %v436_v2 = vmul.f32 %v873_v63, %v865_v48 }
 0x30f   : > { %v437_v3 = vpack.c.bf16 %v436_v2, %v435_v0 }
 0x311   : > { %785 = vmatmul.mubr.msk.bf16.vlgmr.msra.gmra.mrb[4].mxu1 %vm414_vm4, %v437_v3 }
 0x312   : > { %796 = vmatprep.mubr.msk.bf16.mxu1 %vm959_vm1, %v958_v1 }
 0x370   : > { %v549_v4 = vpop.xlane.xlu1 %548 }
 0x371   : > { %874 = vrcp.f32 %v549_v4 }
 0x374   : > { %v552_v5 = vpop.xlane.xlu1 %551 }
 0x375   : > { %876 = vrcp.f32 %v552_v5 }
 0x378   : > { %v560_v6 = vpop.permute.xlu1 %559 }
 0x379   : > { %795 = vmatpush3.bf16.msra.mxu1 %v560_v6 }
 0x37b   : > { %v875_v7 = vpop.eup %874 }
 0x37c   : > { %v555_v9 = vmul.f32 %v875_v7, %v867_v56 }
 0x37f   : > { %v877_v8 = vpop.eup %876 }
 0x380   : > { %v556_v10 = vmul.f32 %v877_v8, %v869_v58 }
 0x382   : > { %v557_v11 = vpack.c.bf16 %v556_v10, %v555_v9 }
 0x384   : > { %797 = vmatmul.mubr.msk.bf16.vlgmr.msra.gmra.mrb[8].mxu1 %vm414_vm4, %v557_v11 }
 0x3e4   : > { %v475_v12 = vpop.f32.mrb[4].mxu1 }
 0x3e5   : > { %v786_v13 = vpop.f32.mrb[5].mxu1 }
 0x3e6   : > { %v478_v14 = vpop.f32.mrb[6].mxu1 }
 0x3e7   : > { %v787_v15 = vpop.f32.mrb[7].mxu1 }
 0x457   : > { %v599_v1 = vpop.f32.mrb[8].mxu1 }
 0x458   : > { %608 = vrot.lane.b32.xlu0 %v599_v1, %s961_s26  ;;  %v798_v16 = vpop.f32.mrb[9].mxu1 }
 0x459   : > { %v602_v17 = vpop.f32.mrb[10].mxu1 }
 0x45a   : > { %610 = vrot.lane.b32.xlu1 %v602_v17, %s961_s26  ;;  %v799_v18 = vpop.f32.mrb[11].mxu1 }
 0x4ca   : > { %v609_v19 = vpop.permute.xlu0 %608 }
 0x4cb   : > { %v614_v20 = vsel %vm366_vm3, %v475_v12, %v609_v19 }
 0x4cc   : > { %617 = vst.msk [vmem:[%s230_s5] sm:$0xff] %vm616_vm5, %v614_v20  ;;  %v611_v21 = vpop.permute.xlu1 %610 }
 0x4cd   : > { %v615_v22 = vsel %vm366_vm3, %v478_v14, %v611_v21 }
 0x4ce   : > { %618 = vst.msk [vmem:[%s230_s5 + $0x8] sm:$0xff] %vm616_vm5, %v615_v22 }
 0x4cf   : > { %891 = shalt.err (!%p888_p5)
}
 0x4d0   : > { %s892_s21 = scalar_lea.hbm %s1109_s10, 256  ;;  %s896_s26 = scalar_lea.hbm %s1162_s4, 512 }
 0x4d1   : > { %p893_p6 = scmp.ne.s32.totalorder %s1109_s10, %s892_s21  ;;  %p897_p10 = scmp.lt.u32.totalorder %s1109_s10, %s1162_s4 }
 0x4d2   : > { %p898_p11 = scmp.lt.u32.totalorder %s896_s26, %s892_s21  ;;  %p900_p13 = scmp.lt.u32.totalorder %s892_s21, %s1109_s10 }
 0x4d3   : > { %p894_p7 = pnand %p893_p6, %p1030_p4 }
 0x4d4   : > { %p899_p12 = por %p898_p11, %p897_p10 }
 0x4d5   : > { %p895_p9 = pneg %p894_p7 }
 0x4d6   : > { %p901_p0 = por %p900_p13, %p899_p12 }
 0x4d8   : > { %p902_p1 = pnand %p901_p0, %p895_p9 }
 0x4da   : > { %905 = shalt.err (!%p902_p1)
}
 0x4db   : > { %s963_s5 = smov 128   ;;  %s964_s7 = smov 8  }
 0x4dc   : > { %800 = dma.vmem_to_hbm [thread:$0]  (%p1030_p4), %s1104_s6, 256, %s1109_s10, %s1112_s18, %s963_s5, %s963_s5, %s964_s7  }
 0x4dd PF: > { %p806_p2 = scmp.ge.s32.totalorder %s956_s20, 2  ;;  %s650_s8 = sand.u32 1, %s936_s15  }
 0x4de   : > { %s651_s9 = scalar_lea.sflag [#allocation3], %s650_s8 }
 0x4df   : > { %p803_p3 = pnand %p806_p2, %p1037_p8 }
 0x4e1   : > { %931 = dma.done.wait (!%p803_p3), %s651_s9, 256  }
 0x4e2   : > { %933 = vsyncadd (!%p803_p3), %s651_s9, 4294967040  ;;  %s17_s20 = sadd.s32 1, %s956_s20   ;;  %s1165_s15 = smov %s940_s16 }
 0x4e3   : > { %p14_p5 = scmp.ge.s32.totalorder %s17_s20, 4   ;;  %s1166_s16 = smov %s944_s17 }
 0x4e4   : > { %s1167_s17 = smov %s1043_s28  ;;  %s1168_s18 = smov %s952_s19 }
 0x4e5   : > { %s1169_s19 = smov %s1171_s23  ;;  %16 = sbr.rel (!%p14_p5) target bundleno = 4 (0x4), region = 74 }
 0x4ec   :  { %656 = vsyncpa [#allocation3], 1 }
 0x4ed   :  { %658 = vsyncpa [#allocation3 + $0x1], 1 }

</bundles_post_ra>
